<compile_context>
chip_gen: v6e
topology: v6e:2x2x1
jax: 0.10.0
libtpu: 0.0.40
codegen_flags: <defaults>
</compile_context>

<pallas_src>
import functools

import jax
import jax.numpy as jnp
from jax import lax
from jax.experimental import pallas as pl
from jax.experimental.pallas import tpu as pltpu

_LANE = 128
_SUBLANE = 8
_CHUNK_BYTES = 256 * 1024        # per-operand bytes per inner accumulation chunk
_BLOCK_BYTES = 4 * 1024 * 1024   # per-operand HBM bytes per grid step (~4 MiB)
_MAX_CHUNKS = 16                 # caps fori_loop unroll and block size
_SMALL_N_FASTPATH = 1 << 20      # below this, plain XLA is faster than a kernel


def _round_up(x: int, m: int) -> int:
    return ((x + m - 1) // m) * m


def _choose_tiling(rows: int, lane: int, itemsize: int) -> tuple[int, int]:
    """Pick (row_tile, chunk_rows): chunk_rows % 8 == 0, row_tile % chunk_rows == 0."""
    bytes_per_row = lane * itemsize
    # Inner chunk: ~256 KiB of input per operand (bounds in-kernel f32 temps).
    chunk_rows = max(_SUBLANE, (_CHUNK_BYTES // bytes_per_row) // _SUBLANE * _SUBLANE)
    # Shrink so >= 2 grid steps exist whenever the data allows it (v7x megacore).
    if rows >= 2 * _SUBLANE:
        chunk_rows = min(chunk_rows, _round_up(pl.cdiv(rows, 2), _SUBLANE))
    else:
        chunk_rows = min(chunk_rows, _round_up(max(rows, 1), _SUBLANE))
    # Grid-step block: ~4 MiB of HBM per operand (dtype-aware), whole chunks only.
    n_chunks = max(1, min(_BLOCK_BYTES // (chunk_rows * bytes_per_row), _MAX_CHUNKS))
    row_tile = chunk_rows * n_chunks
    if rows >= 2 * chunk_rows:
        row_tile = min(row_tile, _round_up(pl.cdiv(rows, 2), chunk_rows))
    row_tile = min(row_tile, _round_up(rows, chunk_rows))
    return row_tile, chunk_rows


def _sse_partial_kernel(yhat_ref, y_ref, out_ref, *, total_rows, row_tile,
                        chunk_rows, lane):
    """Per-grid-step partial sum of squared error, reduced to one (8, lane) slab."""
    i = pl.program_id(0)
    base = i * row_tile
    n_chunks = row_tile // chunk_rows  # exact by construction

    def body(g, acc):
        r0 = pl.multiple_of(g * chunk_rows, chunk_rows)
        d = (yhat_ref[pl.ds(r0, chunk_rows), :].astype(jnp.float32)
             - y_ref[pl.ds(r0, chunk_rows), :].astype(jnp.float32))
        # Zero rows past the logical end (ragged last block reads undefined data).
        row_ids = base + r0 + lax.broadcasted_iota(jnp.int32, (chunk_rows, lane), 0)
        d = jnp.where(row_ids < total_rows, d, 0.0)
        sq = d * d
        # (chunk_rows, lane) -> (chunk_rows//8, 8, lane) splits the sublane-major
        # axis (layout-preserving), so this reduce is plain VPU vreg adds.
        return acc + jnp.sum(sq.reshape(chunk_rows // _SUBLANE, _SUBLANE, lane), axis=0)

    acc0 = jnp.zeros((_SUBLANE, lane), jnp.float32)
    out_ref[...] = lax.fori_loop(0, n_chunks, body, acc0, unroll=True)


def _rmse_loss_pallas(yhat: jax.Array, y: jax.Array) -> jax.Array:
    n = int(yhat.size)
    itemsize = max(yhat.dtype.itemsize, y.dtype.itemsize)

    # Prefer a layout-preserving (rows, last_dim) view when the trailing dim is
    # lane-dense; otherwise fall back to ravel + minimal granule pad.
    if (yhat.ndim >= 2 and yhat.shape[-1] % _LANE == 0
            and yhat.shape[-1] * itemsize * _SUBLANE <= _BLOCK_BYTES):
        lane = int(yhat.shape[-1])
        rows = n // lane
        yhat2d = yhat.reshape(rows, lane)
        y2d = y.reshape(rows, lane)
    else:
        lane = _LANE
        granule = _SUBLANE * _LANE
        padded_len = _round_up(n, granule)
        yhat_f = jnp.ravel(yhat)
        y_f = jnp.ravel(y)
        if padded_len != n:  # zero pad contributes 0 to the SSE
            yhat_f = jnp.pad(yhat_f, (0, padded_len - n))
            y_f = jnp.pad(y_f, (0, padded_len - n))
        rows = padded_len // lane
        yhat2d = yhat_f.reshape(rows, lane)
        y2d = y_f.reshape(rows, lane)

    row_tile, chunk_rows = _choose_tiling(rows, lane, itemsize)
    num_tiles = pl.cdiv(rows, row_tile)

    kernel = functools.partial(
        _sse_partial_kernel,
        total_rows=rows, row_tile=row_tile, chunk_rows=chunk_rows, lane=lane)

    partials = pl.pallas_call(
        kernel,
        out_shape=jax.ShapeDtypeStruct((num_tiles, _SUBLANE, lane), jnp.float32),
        grid=(num_tiles,),
        in_specs=[
            pl.BlockSpec((row_tile, lane), lambda i: (i, 0)),
            pl.BlockSpec((row_tile, lane), lambda i: (i, 0)),
        ],
        out_specs=pl.BlockSpec((None, _SUBLANE, lane), lambda i: (i, 0, 0)),
        compiler_params=pltpu.CompilerParams(
            dimension_semantics=("parallel",),
            vmem_limit_bytes=32 << 20,  # headroom for 16 MiB of double-buffered blocks
        ),
        cost_estimate=pl.CostEstimate(
            flops=3 * n,
            transcendentals=0,
            bytes_accessed=2 * n * itemsize + num_tiles * _SUBLANE * lane * 4,
        ),
    )(yhat2d, y2d)

    # Tiny finalize in plain JAX: num_tiles * 8 * lane floats.
    sse = jnp.sum(partials)
    return jnp.sqrt(sse / n)


def rmse_loss(yhat: jax.Array, y: jax.Array, *,
              min_pallas_elements: int = _SMALL_N_FASTPATH) -> jax.Array:
    """RMSE over all elements, like torch.sqrt(nn.MSELoss()(yhat, y))."""
    assert yhat.shape == y.shape, "yhat and y must have identical shapes"
    n = int(yhat.size)
    if n == 0:
        return jnp.float32(float("nan"))  # matches torch: mean of empty -> nan
    if n < min_pallas_elements:
        # Small-input fast path: fused XLA elementwise + reduce beats kernel
        # dispatch overhead and avoids any reshape/pad traffic.
        d = yhat.astype(jnp.float32) - y.astype(jnp.float32)
        return jnp.sqrt(jnp.mean(d * d))
    return _rmse_loss_pallas(yhat, y)


if __name__ == "__main__":
    key = jax.random.PRNGKey(0)
    k1, k2, k3, k4 = jax.random.split(key, 4)

    def ref_rmse(a, b):
        d = a.astype(jnp.float32) - b.astype(jnp.float32)
        return jnp.sqrt(jnp.mean(d * d))

    # (a) lane-friendly shape (last dim % 128 == 0): layout-preserving path,
    #     forced through the Pallas kernel (2 grid steps).
    shape_a = (2, 4, 24, 128)
    ya = jax.random.normal(k1, shape_a, dtype=jnp.float32)
    yb = jax.random.normal(k2, shape_a, dtype=jnp.float32)
    out_a = rmse_loss(ya, yb, min_pallas_elements=0)
    jax.block_until_ready(out_a)
    assert jnp.allclose(out_a, ref_rmse(ya, yb), rtol=1e-5, atol=1e-6), out_a

    # (b) awkward NCHW-like shape (last dim 16): ravel fallback path, forced
    #     through the Pallas kernel.
    shape_b = (2, 4, 16, 16)
    yc = jax.random.normal(k3, shape_b, dtype=jnp.float32)
    yd = jax.random.normal(k4, shape_b, dtype=jnp.float32)
    out_b = rmse_loss(yc, yd, min_pallas_elements=0)
    jax.block_until_ready(out_b)
    assert jnp.allclose(out_b, ref_rmse(yc, yd), rtol=1e-5, atol=1e-6), out_b

    # (c) default call on the small input exercises the fast path.
    out_c = rmse_loss(yc, yd)
    jax.block_until_ready(out_c)
    assert jnp.allclose(out_c, ref_rmse(yc, yd), rtol=1e-5, atol=1e-6), out_c

    print("KERNEL_OK")
</pallas_src>

<mosaic_0001>
module attributes {stable_mosaic.version = 11 : i64} {
  func.func @_sse_partial_kernel(%arg0: i32, %arg1: memref<96x128xf32, #tpu.memory_space<vmem>>, %arg2: memref<96x128xf32, #tpu.memory_space<vmem>>, %arg3: memref<1x8x128xf32, #tpu.memory_space<vmem>>) attributes {dimension_semantics = [#tpu.dimension_semantics<parallel>], iteration_bounds = array<i64: 2>, scalar_prefetch = 0 : i64, scratch_operands = 0 : i64, tpu.core_type = #tpu.core_type<tc>, window_params = [{transform_indices = @transform_0, window_bounds = array<i64: 96, 128>}, {transform_indices = @transform_1, window_bounds = array<i64: 96, 128>}, {transform_indices = @transform_2, window_bounds = array<i64: 1, 8, 128>}]} {
    %c96_i32 = arith.constant 96 : i32
    %0 = arith.muli %arg0, %c96_i32 : i32
    %cst = arith.constant 0.000000e+00 : f32
    %1 = vector.broadcast %cst : f32 to vector<8x128xf32>
    %c0_i32 = arith.constant 0 : i32
    %c96_i32_0 = arith.constant 96 : i32
    %2 = arith.muli %c0_i32, %c96_i32_0 : i32
    %3 = tpu.assume_multiple %2, 96 : i32
    %4 = arith.index_cast %3 : i32 to index
    %c0 = arith.constant 0 : index
    %5 = vector.load %arg1[%4, %c0] : memref<96x128xf32, #tpu.memory_space<vmem>>, vector<96x128xf32>
    %6 = arith.index_cast %3 : i32 to index
    %c0_1 = arith.constant 0 : index
    %7 = vector.load %arg2[%6, %c0_1] : memref<96x128xf32, #tpu.memory_space<vmem>>, vector<96x128xf32>
    %8 = arith.subf %5, %7 : vector<96x128xf32>
    %9 = arith.addi %0, %3 : i32
    %10 = tpu.iota {dimensions = array<i32: 0>} : vector<96x128xi32>
    %11 = vector.broadcast %9 : i32 to vector<96x128xi32>
    %12 = arith.addi %11, %10 : vector<96x128xi32>
    %c192_i32 = arith.constant 192 : i32
    %13 = vector.broadcast %c192_i32 : i32 to vector<96x128xi32>
    %14 = arith.cmpi slt, %12, %13 : vector<96x128xi32>
    %cst_2 = arith.constant 0.000000e+00 : f32
    %15 = vector.broadcast %cst_2 : f32 to vector<96x128xf32>
    %16 = arith.select %14, %8, %15 : vector<96x128xi1>, vector<96x128xf32>
    %17 = arith.mulf %16, %16 : vector<96x128xf32>
    %18 = vector.shape_cast %17 : vector<96x128xf32> to vector<12x8x128xf32>
    %cst_3 = arith.constant dense<0.000000e+00> : vector<8x128xf32>
    %19 = vector.multi_reduction <add>, %18, %cst_3 [0] : vector<12x8x128xf32> to vector<8x128xf32>
    %20 = arith.addf %1, %19 : vector<8x128xf32>
    %c1_i32 = arith.constant 1 : i32
    %c0_4 = arith.constant 0 : index
    %c0_5 = arith.constant 0 : index
    %c0_6 = arith.constant 0 : index
    %21 = vector.load %arg3[%c0_4, %c0_5, %c0_6] : memref<1x8x128xf32, #tpu.memory_space<vmem>>, vector<1x8x128xf32>
    %22 = vector.shape_cast %21 : vector<1x8x128xf32> to vector<8x128xf32>
    %23 = vector.shape_cast %20 : vector<8x128xf32> to vector<1x8x128xf32>
    tpu.vector_store %arg3[%c0_4, %c0_5, %c0_6], %23 {strides = array<i32>} : memref<1x8x128xf32, #tpu.memory_space<vmem>>, vector<1x8x128xf32>,
    return
  }
  func.func @transform_0(%arg0: i32) -> (i32, i32) {
    %c0_i32 = arith.constant 0 : i32
    %c0_i32_0 = arith.constant 0 : i32
    return %arg0, %c0_i32 : i32, i32
  }
  func.func @transform_1(%arg0: i32) -> (i32, i32) {
    %c0_i32 = arith.constant 0 : i32
    %c0_i32_0 = arith.constant 0 : i32
    return %arg0, %c0_i32 : i32, i32
  }
  func.func @transform_2(%arg0: i32) -> (i32, i32, i32) {
    %c0_i32 = arith.constant 0 : i32
    %c0_i32_0 = arith.constant 0 : i32
    %c0_i32_1 = arith.constant 0 : i32
    return %arg0, %c0_i32, %c0_i32_0 : i32, i32, i32
  }
}

</mosaic_0001>

<bundles_post_ra>
// kernel: tpu_custom_call.1
= control target key start
LH: loop header
LB: loop body
LE: loop exit
PB: predicated region body
PF: predicated region fallthrough
CT: control target
= control target key end

     0   :  { %7 = vsyncpa [#allocation3], 0  ;;  %s895_s0 = inlined_call_operand.hbm [shape: f32[192,128], index: 0, kind: input, shape index: {}]   ;;  %s896_s1 = inlined_call_operand.hbm [shape: f32[192,128], index: 1, kind: input, shape index: {}]   ;;  %s897_s2 = inlined_call_operand.hbm [shape: f32[2,8,128], index: 2, kind: output, shape index: {}]  }
   0x1   :  { %9 = vsyncpa [#allocation3 + $0x1], 0 }
   0x2   :  { %10 = vsyncpa [#allocation6], 0 }
   0x3   :  { %12 = vsyncpa [#allocation6 + $0x1], 0 }
   0x4   :  { %13 = vsyncpa [#allocation4], 0 }
   0x5   :  { %15 = vsyncpa [#allocation4 + $0x1], 0  ;;  %s639_s9 = smov 0   ;;  %s641_s10 = smov 0  }
   0x6   :  { %s643_s11 = smov 0   ;;  %s645_s12 = smov 0  }
   0x7 LB: > { %s660_s13 = sadd.s32 4294967295, %s617_s12   ;;  %s424_s14 = sadd.s32 4294967294, %s617_s12   ;;  %s617_s12 = sphi %s645_s12, %s912_s12   ;;  %s613_s11 = sphi %s643_s11, %s911_s11   ;;  %s609_s10 = sphi %s641_s10, %s910_s10   ;;  %s605_s9 = sphi %s639_s9, %s909_s9  }
   0x8   : > { %s664_s15 = sadd.s32 1, %s617_s12   ;;  %s28_s16 = sadd.s32 1, %s613_s11 }
   0x9   : > { %s25_s17 = ssub.s32 %s617_s12, %s664_s15  ;;  %p35_p0 = scmp.ne.s32.totalorder %s613_s11, %s609_s10 }
   0xa   : > { %p26_p1 = scmp.eq.s32.totalorder %s25_s17, 0  ;;  %p36_p2 = scmp.eq.s32.totalorder %s617_s12, 0 }
   0xb   : > { %p41_p3 = scmp.ne.s32.totalorder %s609_s10, %s605_s9  ;;  %p42_p4 = scmp.eq.s32.totalorder %s660_s13, 0 }
   0xc   : > { %s676_s18 = scalar_select %p26_p1, %s613_s11, %s28_s16  }
   0xd   : > { %p37_p5 = por %p36_p2, %p35_p0  ;;  %p678_p6 = por %p42_p4, %p41_p3 }
   0xe   : > { %p91_p7 = scmp.eq.s32.totalorder %s660_s13, 1  ;;  %p97_p8 = scmp.eq.s32.totalorder %s424_s14, 1 }
   0xf   : > { %s900_s19 = scalar_select %p678_p6, 1, 0 }
  0x10   : > { %p457_p10 = scmp.lt.s32.totalorder %s617_s12, 2  ;;  %p685_p11 = por %p91_p7, %p35_p0 }
  0x11   : > { %p689_p12 = por %p97_p8, %p41_p3  ;;  %s694_s22 = sand.u32 1, %s613_s11  }
  0x12   : > { %s901_s20 = scalar_select %p685_p11, 1, 0 }
  0x13   : > { %s902_s21 = scalar_select %p689_p12, 1, 0 }
  0x14   : > { %s435_s23 = smul.u32 1536, %s617_s12  ;;  %p705_p13 = pnand %p457_p10, %p37_p5 }
  0x15   : > { %s437_s24 = smul.u32 96, %s694_s22  ;;  %s118_s3 = scalar_lea.sflag [#allocation3], %s694_s22 }
  0x16   : > { %s703_s27 = scalar_lea.hbm %s895_s0, %s435_s23  ;;  %p495_p1 = pneg %p705_p13 }
  0x17   : > { %s121_s29 = scalar_lea.vmem [#allocation2], %s437_s24  ;;  %s493_s4 = scalar_lea.hbm %s703_s27, 1536 }
  0x18   : > { %s128_s30 = sshll.u32 %s121_s29, 4  ;;  %p494_p0 = scmp.ne.s32.totalorder %s703_s27, %s493_s4  ;;  %s711_s30 = int_to_ptr.vmem [resolvable:$true] %s128_s30 }
  0x19   : > { %s498_s7 = scalar_lea.hbm %s895_s0, 3072  ;;  %p499_p4 = scmp.lt.s32.totalorder %s703_s27, %s895_s0 }
  0x1a   : > { %p496_p2 = pnand %p495_p1, %p494_p0  ;;  %p500_p5 = scmp.lt.s32.totalorder %s498_s7, %s493_s4 }
  0x1c   : > { %p497_p3 = pneg %p496_p2  ;;  %p501_p7 = por %p500_p5, %p499_p4 }
  0x1e   : > { %p502_p8 = pnand %p501_p7, %p497_p3 }
  0x20   : > { %505 = shalt.err (!%p502_p8)
}
  0x21   : > { %s506_s16 = scalar_lea.vmem %s711_s30, 1536  ;;  %s619_s17 = smov [#allocation2]  }
  0x22   : > { %p507_p10 = scmp.ne.s32.totalorder %s711_s30, %s506_s16  ;;  %s511_s25 = sshll.u32 %s619_s17, 4  ;;  %s512_s25 = int_to_ptr.vmem [resolvable:$false] %s511_s25 }
  0x23   : > { %s513_s26 = scalar_lea.vmem %s512_s25, 3072  ;;  %p514_p9 = scmp.lt.s32.totalorder %s711_s30, %s512_s25 }
  0x24   : > { %p509_p0 = pnand %p507_p10, %p495_p1  ;;  %p515_p12 = scmp.lt.s32.totalorder %s513_s26, %s506_s16 }
  0x26   : > { %p510_p2 = pneg %p509_p0  ;;  %p516_p11 = por %p515_p12, %p514_p9 }
  0x28   : > { %p517_p4 = pnand %p516_p11, %p510_p2 }
  0x2a   : > { %520 = shalt.err (!%p517_p4)
}
  0x2b   : > { %s620_s29 = smov 128   ;;  %s621_s4 = smov 8  }
  0x2c   : > { %449 = dma.hbm_to_vmem [thread:$0]  (!%p705_p13), %s703_s27, 1536, %s711_s30, %s118_s3, %s620_s29, %s620_s29, %s621_s4  }
  0x2d   : > { %p429_p9 = scmp.ge.s32.totalorder %s617_s12, 1  ;;  %p157_p11 = scmp.lt.s32.totalorder %s617_s12, 3 }
  0x2e   : > { %s754_s8 = scalar_lea.hbm %s896_s1, %s435_s23  ;;  %s142_s14 = scalar_lea.vmem [#allocation5], %s437_s24 }
  0x2f   : > { %p745_p12 = pnand %p429_p9, %p157_p11  ;;  %s149_s16 = sshll.u32 %s142_s14, 4  ;;  %s758_s16 = int_to_ptr.vmem [resolvable:$true] %s149_s16 }
  0x30   : > { %s139_s27 = scalar_lea.sflag [#allocation6], %s694_s22  ;;  %s521_s30 = scalar_lea.hbm %s754_s8, 1536 }
  0x31   : > { %p522_p3 = scmp.ne.s32.totalorder %s754_s8, %s521_s30  ;;  %s526_s23 = scalar_lea.hbm %s896_s1, 3072 }
  0x32   : > { %p527_p8 = scmp.lt.s32.totalorder %s754_s8, %s896_s1  ;;  %p528_p10 = scmp.lt.s32.totalorder %s526_s23, %s521_s30 }
  0x33   : > { %p524_p5 = pnand %p522_p3, %p495_p1 }
  0x34   : > { %p529_p0 = por %p528_p10, %p527_p8 }
  0x35   : > { %p525_p7 = pneg %p524_p5 }
  0x37   : > { %p530_p2 = pnand %p529_p0, %p525_p7 }
  0x39   : > { %533 = shalt.err (!%p530_p2)
}
  0x3a   : > { %s534_s22 = scalar_lea.vmem %s758_s16, 1536  ;;  %s622_s24 = smov [#allocation5]  }
  0x3b   : > { %p535_p4 = scmp.ne.s32.totalorder %s758_s16, %s534_s22  ;;  %s539_s6 = sshll.u32 %s622_s24, 4  ;;  %s540_s6 = int_to_ptr.vmem [resolvable:$false] %s539_s6 }
  0x3c   : > { %s541_s7 = scalar_lea.vmem %s540_s6, 3072  ;;  %p542_p3 = scmp.lt.s32.totalorder %s758_s16, %s540_s6 }
  0x3d   : > { %p537_p9 = pnand %p535_p4, %p495_p1  ;;  %p543_p5 = scmp.lt.s32.totalorder %s541_s7, %s534_s22 }
  0x3f   : > { %p538_p11 = pneg %p537_p9  ;;  %p544_p6 = por %p543_p5, %p542_p3 }
  0x41   : > { %p545_p8 = pnand %p544_p6, %p538_p11 }
  0x43   : > { %548 = shalt.err (!%p545_p8)
}
  0x44   : > { %452 = dma.hbm_to_vmem [thread:$0]  (!%p705_p13), %s754_s8, 1536, %s758_s16, %s139_s27, %s620_s29, %s620_s29, %s621_s4  }
  0x45   : > { %161 = sbr.rel (%p745_p12) target bundleno = 125 (0x7d), region = 28  ;;  %s789_s14 = sand.u32 (!%p745_p12), 1, %s609_s10  }
  0x46   : > { %s439_s30 = smul.u32 (!%p745_p12), 96, %s789_s14  ;;  %s164_s3 = scalar_lea.sflag (!%p745_p12), [#allocation3], %s789_s14 }
  0x47   : > { %p905_p6 = scmp.ne.s32.totalorder (!%p745_p12), %s900_s19, 0 }
  0x48   : > { %s793_s17 = scalar_lea.vmem (!%p745_p12), [#allocation2], %s439_s30 }
  0x4a   : > { %592 = dma.done.wait (%p905_p6), %s164_s3, 1536  }
  0x4b   : > { %594 = vsyncadd (%p905_p6), %s164_s3, 4294965760  ;;  %s173_s28 = scalar_lea.sflag [#allocation6], %s789_s14  ;;  %s800_s29 = scalar_lea.vmem [#allocation5], %s439_s30 }
  0x4c   : > { %596 = dma.done.wait (%p905_p6), %s173_s28, 1536  }
  0x4d   : > { %598 = vsyncadd (%p905_p6), %s173_s28, 4294965760  ;;  %v242_v0 = vlaneseq  ;;  %s204_s4 = smul.u32 96, %s660_s13  ;;  %v205_v6 = vld [vmem:[%s793_s17] sm:$0xff]  ;;  %v206_v7 = vld [vmem:[%s793_s17 + $0x8] sm:$0xff]  ;;  %s430_s19 = sshll.u32 %s789_s14, 3 }
  0x4e   : > { %v207_v10 = vld [vmem:[%s793_s17 + $0x10] sm:$0xff]  ;;  %v217_v13 = vld [vmem:[%s800_s29] sm:$0xff]  ;;  %v218_v14 = vld [vmem:[%s800_s29 + $0x8] sm:$0xff]  ;;  %s201_s5 = scalar_lea.vmem [#allocation7], %s430_s19  ;;  %s432_s16 = sshll.u32 %s660_s13, 7 }
  0x4f   : > { %v807_v1 = vshrl.u32 %v242_v0, 7  ;;  %v811_v4 = vstv %s204_s4  ;;  %v219_v15 = vld [vmem:[%s800_s29 + $0x10] sm:$0xff]  ;;  %v208_v16 = vld [vmem:[%s793_s17 + $0x18] sm:$0xff]  ;;  %v229_v18 = vsub.f32 %v205_v6, %v217_v13  ;;  %v230_v19 = vsub.f32 %v206_v7, %v218_v14  ;;  %v209_v23 = vld [vmem:[%s793_s17 + $0x20] sm:$0xff]  ;;  %s331_s8 = sshll.u32 %s201_s5, 4  ;;  %s329_s25 = scalar_lea.hbm %s897_s2, %s432_s16  ;;  %s332_s8 = int_to_ptr.vmem [resolvable:$true] %s331_s8 }
  0x50   : > { %v220_v17 = vld [vmem:[%s800_s29 + $0x18] sm:$0xff]  ;;  %v231_v22 = vsub.f32 %v207_v10, %v219_v15  ;;  %v221_v24 = vld [vmem:[%s800_s29 + $0x20] sm:$0xff]  ;;  %v210_v29 = vld [vmem:[%s793_s17 + $0x28] sm:$0xff]  ;;  %s318_s26 = scalar_lea.sflag [#allocation4], %s789_s14  ;;  %s549_s22 = scalar_lea.vmem %s332_s8, 128 }
  0x51   : > { %v244_v2 = vadd.s32 8, %v807_v1  ;;  %v245_v3 = vadd.s32 16, %v807_v1  ;;  %v246_v5 = vadd.s32 24, %v807_v1  ;;  %v256_v8 = vadd.s32 %v811_v4, %v807_v1  ;;  %v222_v30 = vld [vmem:[%s800_s29 + $0x28] sm:$0xff]  ;;  %v211_v36 = vld [vmem:[%s793_s17 + $0x30] sm:$0xff]  ;;  %v212_v44 = vld [vmem:[%s793_s17 + $0x38] sm:$0xff]  ;;  %p550_p13 = scmp.ne.s32.totalorder %s332_s8, %s549_s22 }
  0x52   : > { %v247_v11 = vadd.s32 32, %v807_v1  ;;  %v248_v20 = vadd.s32 40, %v807_v1  ;;  %v249_v25 = vadd.s32 48, %v807_v1  ;;  %v232_v27 = vsub.f32 %v208_v16, %v220_v17  ;;  %v223_v37 = vld [vmem:[%s800_s29 + $0x30] sm:$0xff]  ;;  %v224_v45 = vld [vmem:[%s800_s29 + $0x38] sm:$0xff]  ;;  %v213_v52 = vld [vmem:[%s793_s17 + $0x40] sm:$0xff] }
  0x53   : > { %v257_v9 = vadd.s32 %v811_v4, %v244_v2  ;;  %v258_v12 = vadd.s32 %v811_v4, %v245_v3  ;;  %v259_v21 = vadd.s32 %v811_v4, %v246_v5  ;;  %vm268_vm0 = vcmp.lt.s32.totalorder %v256_v8, 192  ;;  %v225_v53 = vld [vmem:[%s800_s29 + $0x40] sm:$0xff]  ;;  %v214_v60 = vld [vmem:[%s793_s17 + $0x48] sm:$0xff]  ;;  %v215_v5 = vld [vmem:[%s793_s17 + $0x50] sm:$0xff]  ;;  %p906_p1 = scmp.ne.s32.totalorder %s901_s20, 0  ;;  %s623_s24 = smov [#allocation7]  }
  0x54   : > { %v260_v26 = vadd.s32 %v811_v4, %v247_v11  ;;  %v250_v28 = vadd.s32 56, %v807_v1  ;;  %v261_v31 = vadd.s32 %v811_v4, %v248_v20  ;;  %v280_v32 = vsel %vm268_vm0, %v229_v18, 0.0  ;;  %v226_v61 = vld [vmem:[%s800_s29 + $0x48] sm:$0xff]  ;;  %v227_v6 = vld [vmem:[%s800_s29 + $0x50] sm:$0xff]  ;;  %v216_v11 = vld [vmem:[%s793_s17 + $0x58] sm:$0xff]  ;;  %s553_s6 = sshll.u32 %s623_s24, 4  ;;  %s554_s6 = int_to_ptr.vmem [resolvable:$false] %s553_s6 }
  0x55   : > { %vm269_vm1 = vcmp.lt.s32.totalorder %v257_v9, 192  ;;  %vm270_vm2 = vcmp.lt.s32.totalorder %v258_v12, 192  ;;  %vm271_vm3 = vcmp.lt.s32.totalorder %v259_v21, 192  ;;  %v233_v34 = vsub.f32 %v209_v23, %v221_v24  ;;  %v228_v12 = vld [vmem:[%s800_s29 + $0x58] sm:$0xff]  ;;  %p551_p12 = pnand %p550_p13, %p906_p1  ;;  %s555_s7 = scalar_lea.vmem %s554_s6, 256 }
  0x56   : > { %v281_v33 = vsel %vm269_vm1, %v230_v19, 0.0  ;;  %v282_v35 = vsel %vm270_vm2, %v231_v22, 0.0  ;;  %v251_v38 = vadd.s32 64, %v807_v1  ;;  %v262_v39 = vadd.s32 %v811_v4, %v249_v25  ;;  %p556_p10 = scmp.lt.s32.totalorder %s332_s8, %s554_s6  ;;  %p557_p0 = scmp.lt.s32.totalorder %s555_s7, %s549_s22 }
  0x57   : > { %vm272_vm4 = vcmp.lt.s32.totalorder %v260_v26, 192  ;;  %v234_v40 = vsub.f32 %v210_v29, %v222_v30  ;;  %v283_v41 = vsel %vm271_vm3, %v232_v27, 0.0  ;;  %v292_v42 = vmul.f32 %v280_v32, %v280_v32  ;;  %p552_p7 = pneg %p551_p12 }
  0x58   : > { %v293_v43 = vmul.f32 %v281_v33, %v281_v33  ;;  %v252_v46 = vadd.s32 72, %v807_v1  ;;  %v263_v47 = vadd.s32 %v811_v4, %v250_v28  ;;  %vm273_vm5 = vcmp.lt.s32.totalorder %v261_v31, 192  ;;  %p558_p2 = por %p557_p0, %p556_p10 }
  0x59   : > { %v294_v48 = vmul.f32 %v282_v35, %v282_v35  ;;  %v235_v49 = vsub.f32 %v211_v36, %v223_v37  ;;  %v253_v50 = vadd.s32 80, %v807_v1  ;;  %v284_v51 = vsel %vm272_vm4, %v233_v34, 0.0 }
  0x5a   : > { %v264_v54 = vadd.s32 %v811_v4, %v251_v38  ;;  %vm274_vm6 = vcmp.lt.s32.totalorder %v262_v39, 192  ;;  %v295_v55 = vmul.f32 %v283_v41, %v283_v41  ;;  %v304_v56 = vadd.f32 %v293_v43, %v292_v42  ;;  %p559_p4 = pnand %p558_p2, %p552_p7 }
  0x5b   : > { %v236_v57 = vsub.f32 %v212_v44, %v224_v45  ;;  %v254_v58 = vadd.s32 88, %v807_v1  ;;  %v285_v59 = vsel %vm273_vm5, %v234_v40, 0.0  ;;  %v265_v62 = vadd.s32 %v811_v4, %v252_v46 }
  0x5c   : > { %vm275_vm7 = vcmp.lt.s32.totalorder %v263_v47, 192  ;;  %v296_v63 = vmul.f32 %v284_v51, %v284_v51  ;;  %v305_v0 = vadd.f32 %v304_v56, %v294_v48  ;;  %v237_v2 = vsub.f32 %v213_v52, %v225_v53 }
  0x5d   : > { %v286_v3 = vsel %vm274_vm6, %v235_v49, 0.0  ;;  %v266_v7 = vadd.s32 %v811_v4, %v253_v50  ;;  %vm276_vm8 = vcmp.lt.s32.totalorder %v264_v54, 192  ;;  %v297_v8 = vmul.f32 %v285_v59, %v285_v59 }
  0x5e   : > { %v306_v9 = vadd.f32 %v305_v0, %v295_v55  ;;  %v238_v1 = vsub.f32 %v214_v60, %v226_v61  ;;  %v287_v10 = vsel %vm275_vm7, %v236_v57, 0.0  ;;  %v267_v13 = vadd.s32 %v811_v4, %v254_v58 }
  0x5f   : > { %vm277_vm9 = vcmp.lt.s32.totalorder %v265_v62, 192  ;;  %v298_v14 = vmul.f32 %v286_v3, %v286_v3  ;;  %v239_v16 = vsub.f32 %v215_v5, %v227_v6  ;;  %v288_v17 = vsel %vm276_vm8, %v237_v2, 0.0 }
  0x60   : > { %v307_v15 = vadd.f32 %v306_v9, %v296_v63  ;;  %vm278_vm10 = vcmp.lt.s32.totalorder %v266_v7, 192  ;;  %v299_v18 = vmul.f32 %v287_v10, %v287_v10  ;;  %v240_v20 = vsub.f32 %v216_v11, %v228_v12 }
  0x61   : > { %v289_v21 = vsel %vm277_vm9, %v238_v1, 0.0  ;;  %vm279_vm11 = vcmp.lt.s32.totalorder %v267_v13, 192  ;;  %v300_v22 = vmul.f32 %v288_v17, %v288_v17  ;;  %v290_v24 = vsel %vm278_vm10, %v239_v16, 0.0 }
  0x62   : > { %v308_v19 = vadd.f32 %v307_v15, %v297_v8  ;;  %v301_v25 = vmul.f32 %v289_v21, %v289_v21  ;;  %v291_v4 = vsel %vm279_vm11, %v240_v20, 0.0  ;;  %v302_v27 = vmul.f32 %v290_v24, %v290_v24 }
  0x63   : > { %v303_v29 = vmul.f32 %v291_v4, %v291_v4 }
  0x64   : > { %v309_v23 = vadd.f32 %v308_v19, %v298_v14 }
  0x66   : > { %v310_v26 = vadd.f32 %v309_v23, %v299_v18 }
  0x68   : > { %v311_v28 = vadd.f32 %v310_v26, %v300_v22 }
  0x6a   : > { %v312_v30 = vadd.f32 %v311_v28, %v301_v25 }
  0x6c   : > { %v313_v31 = vadd.f32 %v312_v30, %v302_v27 }
  0x6e   : > { %v314_v32 = vadd.f32 %v313_v31, %v303_v29 }
  0x70   : > { %316 = vst [vmem:[%s201_s5] sm:$0xff] %v314_v32 }
  0x71   : > { %562 = shalt.err (!%p559_p4)
}
  0x72   : > { %s563_s13 = scalar_lea.hbm %s329_s25, 128  ;;  %s567_s3 = scalar_lea.hbm %s897_s2, 256 }
  0x73   : > { %p564_p9 = scmp.ne.s32.totalorder %s329_s25, %s563_s13  ;;  %p568_p5 = scmp.lt.s32.totalorder %s329_s25, %s897_s2 }
  0x74   : > { %p569_p8 = scmp.lt.s32.totalorder %s567_s3, %s563_s13 }
  0x75   : > { %p565_p11 = pnand %p564_p9, %p906_p1 }
  0x76   : > { %p570_p6 = por %p569_p8, %p568_p5 }
  0x77   : > { %p566_p3 = pneg %p565_p11 }
  0x79   : > { %p571_p13 = pnand %p570_p6, %p566_p3 }
  0x7b   : > { %574 = shalt.err (!%p571_p13)
}
  0x7c   : > { %444 = dma.vmem_to_hbm [thread:$0]  (%p906_p1), %s332_s8, 128, %s329_s25, %s318_s26  }
  0x7d PF: > { %s343_s29 = sand.u32 1, %s605_s9   ;;  %p907_p12 = scmp.ne.s32.totalorder %s902_s21, 0 }
  0x7e   : > { %p908_p7 = scmp.ge.s32.totalorder %s617_s12, 2  ;;  %s344_s4 = scalar_lea.sflag [#allocation4], %s343_s29 }
  0x80   : > { %p454_p10 = pnand %p908_p7, %p907_p12 }
  0x82   : > { %p455_p0 = pneg %p454_p10 }
  0x84   : > { %600 = dma.done.wait (%p455_p0), %s344_s4, 128  }
  0x85   : > { %602 = vsyncadd (%p455_p0), %s344_s4, 4294967168  ;;  %p18_p2 = scmp.ge.s32.totalorder %s664_s15, 4   ;;  %s909_s9 = smov %s609_s10 }
  0x86   : > { %s910_s10 = smov %s613_s11  ;;  %s911_s11 = smov %s676_s18 }
  0x87   : > { %s912_s12 = smov %s664_s15  ;;  %20 = sbr.rel (!%p18_p2) target bundleno = 7 (0x7), region = 86 }
  0x8c   :  { %349 = vsyncpa [#allocation3], 1 }
  0x8d   :  { %351 = vsyncpa [#allocation3 + $0x1], 1 }
  0x8e   :  { %352 = vsyncpa [#allocation6], 1 }
  0x8f   :  { %354 = vsyncpa [#allocation6 + $0x1], 1 }
  0x90   :  { %355 = vsyncpa [#allocation4], 1 }
  0x91   :  { %357 = vsyncpa [#allocation4 + $0x1], 1 }

</bundles_post_ra>
